<compile_context>
chip_gen: v7x
topology: tpu7x:2x2x1
jax: 0.10.0
libtpu: 0.0.40
codegen_flags: <defaults>
</compile_context>

<pallas_src>
import functools

import jax
import jax.numpy as jnp
from jax.experimental import pallas as pl
from jax.experimental.pallas import tpu as pltpu


# Padded feature sizes (TPU tile friendly).
IN_PAD = 16     # input features 9  -> 16 (bf16 sublane packing of the K dim)
HID_PAD = 128   # hidden features 100 -> 128 (full lane width)


def _round_up(x, m):
    return (x + m - 1) // m * m


def _mlp_kernel(x_ref, w1_ref, b1_ref, w2_ref, b2_ref, w3_ref, b3_ref,
                w4_ref, b4_ref, o_ref):
    def leaky(v):
        # mul + max (2 VALU ops) instead of cmp + mul + select.
        return jnp.maximum(v, 0.2 * v)

    # Hidden layers: bf16 x bf16 -> f32 on the MXU, bias + LeakyReLU in f32 on the VPU.
    h = jnp.dot(x_ref[...], w1_ref[...],
                preferred_element_type=jnp.float32) + b1_ref[...]
    h = leaky(h)
    h = jnp.dot(h.astype(jnp.bfloat16), w2_ref[...],
                preferred_element_type=jnp.float32) + b2_ref[...]
    h = leaky(h)
    h = jnp.dot(h.astype(jnp.bfloat16), w3_ref[...],
                preferred_element_type=jnp.float32) + b3_ref[...]
    h = leaky(h)

    # Final Linear(100 -> 1): VPU broadcast-multiply + XLU lane reduction.
    # (No padded 4th MXU matmul, no throwaway output columns.)  The bf16 round
    # trip matches the bf16-product / f32-accumulate numerics of the reference.
    prod = h.astype(jnp.bfloat16).astype(jnp.float32) * w4_ref[...]
    y = jnp.sum(prod, axis=-1, keepdims=True) + b4_ref[...]
    o_ref[...] = y.astype(o_ref.dtype)


def prepare_params(params):
    """Cast weights to bf16 and zero-pad to TPU tiles.  Call ONCE and reuse
    (hoisted out of the per-forward hot path)."""
    (w1, b1), (w2, b2), (w3, b3), (w4, b4) = params

    def pad_w(w, rows, cols):
        out = jnp.zeros((rows, cols), jnp.bfloat16)
        return out.at[:w.shape[0], :w.shape[1]].set(w.astype(jnp.bfloat16))

    def pad_b(b, cols):
        b = jnp.reshape(b, (1, -1))      # accept (fan_out,) or (1, fan_out)
        out = jnp.zeros((1, cols), jnp.float32)
        return out.at[:, :b.shape[1]].set(b.astype(jnp.float32))

    # Final-layer weight (100, 1) -> lane row (1, 128), bf16-rounded then kept
    # in f32 for the in-kernel VPU multiply (exact bf16-product semantics).
    w4_row = jnp.zeros((1, HID_PAD), jnp.float32)
    w4_row = w4_row.at[0, :w4.shape[0]].set(
        w4.reshape(-1).astype(jnp.bfloat16).astype(jnp.float32))
    b4_s = jnp.reshape(b4, (1, 1)).astype(jnp.float32)

    return (pad_w(w1, IN_PAD, HID_PAD), pad_b(b1, HID_PAD),
            pad_w(w2, HID_PAD, HID_PAD), pad_b(b2, HID_PAD),
            pad_w(w3, HID_PAD, HID_PAD), pad_b(b3, HID_PAD),
            w4_row, b4_s)


def lgn_discriminator_forward(x, padded_params, *, block_rows=2048):
    """x: (B, input_size) float32.  Returns (B,) float32 (matches .view(-1))."""
    B, in_features = x.shape
    assert in_features <= IN_PAD
    w1, b1, w2, b2, w3, b3, w4, b4 = padded_params

    # Batch tile: multiple of 16 (bf16 sublane packing), capped at block_rows
    # and at ceil(B/2) so large B always gives >= 2 grid steps (v7x megacore
    # sharding of the "parallel" batch axis); tiny B -> a single small tile.
    tb_cap = _round_up(block_rows, 16)
    half = _round_up(max(-(-B // 2), 8), 16)
    tb = max(16, min(tb_cap, half))
    b_pad = _round_up(B, tb)

    x_p = jnp.zeros((b_pad, IN_PAD), jnp.bfloat16)
    x_p = x_p.at[:B, :in_features].set(x.astype(jnp.bfloat16))

    grid = (b_pad // tb,)

    flops = (2 * b_pad * (IN_PAD * HID_PAD + 2 * HID_PAD * HID_PAD)   # 3 MXU matmuls
             + 2 * b_pad * HID_PAD)                                   # final VPU mul+reduce
    bytes_accessed = (x_p.size * 2
                      + (w1.size + w2.size + w3.size) * 2 + w4.size * 4
                      + (b1.size + b2.size + b3.size + b4.size) * 4
                      + b_pad * 4)                                    # slim (b_pad, 1) output

    def wspec(shape):
        # Weights / biases: same block every grid step (stay resident in VMEM).
        return pl.BlockSpec(shape, lambda i: (0, 0))

    out = pl.pallas_call(
        _mlp_kernel,
        out_shape=jax.ShapeDtypeStruct((b_pad, 1), jnp.float32),
        grid=grid,
        in_specs=[
            pl.BlockSpec((tb, IN_PAD), lambda i: (i, 0)),   # x: tiled over batch
            wspec((IN_PAD, HID_PAD)), wspec((1, HID_PAD)),  # w1, b1
            wspec((HID_PAD, HID_PAD)), wspec((1, HID_PAD)),  # w2, b2
            wspec((HID_PAD, HID_PAD)), wspec((1, HID_PAD)),  # w3, b3
            wspec((1, HID_PAD)), wspec((1, 1)),              # w4 row, b4 scalar
        ],
        out_specs=pl.BlockSpec((tb, 1), lambda i: (i, 0)),
        compiler_params=pltpu.CompilerParams(
            dimension_semantics=("parallel",)),              # megacore batch sharding
        cost_estimate=pl.CostEstimate(
            flops=int(flops), transcendentals=0,
            bytes_accessed=int(bytes_accessed)),
    )(x_p, w1, b1, w2, b2, w3, b3, w4, b4)

    # (b_pad, 1) -> contiguous reshape, drop batch padding.
    return out.reshape(-1)[:B]


def init_params(key, input_size=9, hidden_sizes=(100, 100, 100)):
    """Deterministic synthetic init mimicking nn.Linear's U(-1/sqrt(fan_in), 1/sqrt(fan_in))."""
    sizes = [input_size, *hidden_sizes, 1]
    params = []
    for i in range(len(sizes) - 1):
        fan_in, fan_out = sizes[i], sizes[i + 1]
        key, kw, kb = jax.random.split(key, 3)
        bound = 1.0 / (fan_in ** 0.5)
        # stored as (in, out) so the forward computes x @ W
        w = jax.random.uniform(kw, (fan_in, fan_out), jnp.float32, -bound, bound)
        b = jax.random.uniform(kb, (1, fan_out), jnp.float32, -bound, bound)
        params.append((w, b))
    return params


def reference_forward(x, params):
    """Plain-JAX reference using the same bf16-matmul / f32-accumulate numerics."""
    h = x
    n = len(params)
    for i, (w, b) in enumerate(params):
        y = jnp.dot(h.astype(jnp.bfloat16), w.astype(jnp.bfloat16),
                    preferred_element_type=jnp.float32) + b
        h = jnp.maximum(y, 0.2 * y) if i < n - 1 else y
    return h.reshape(-1)


if __name__ == "__main__":
    key = jax.random.PRNGKey(0)
    key, kx = jax.random.split(key)

    batch = 8
    input_size = 9
    x = jax.random.normal(kx, (batch, input_size), dtype=jnp.float32)

    params = init_params(key, input_size=input_size, hidden_sizes=(100, 100, 100))
    padded_params = prepare_params(params)          # pad/cast once, reuse

    forward = jax.jit(lgn_discriminator_forward)    # single jit: x-padding fuses, params constant-fold
    out = forward(x, padded_params)
    out = jax.block_until_ready(out)

    ref = reference_forward(x, params)
    assert out.shape == (batch,), out.shape
    assert jnp.allclose(out, ref, atol=2e-3, rtol=2e-3), (out, ref)

    print("KERNEL_OK")
</pallas_src>

<mosaic_0001>
module attributes {stable_mosaic.version = 11 : i64} {
  func.func @_mlp_kernel(%arg0: i32, %arg1: memref<16x16xbf16, #tpu.memory_space<vmem>>, %arg2: memref<16x128xbf16, #tpu.memory_space<vmem>>, %arg3: memref<1x128xf32, #tpu.memory_space<vmem>>, %arg4: memref<128x128xbf16, #tpu.memory_space<vmem>>, %arg5: memref<1x128xf32, #tpu.memory_space<vmem>>, %arg6: memref<128x128xbf16, #tpu.memory_space<vmem>>, %arg7: memref<1x128xf32, #tpu.memory_space<vmem>>, %arg8: memref<1x128xf32, #tpu.memory_space<vmem>>, %arg9: memref<1x1xf32, #tpu.memory_space<vmem>>, %arg10: memref<16x1xf32, #tpu.memory_space<vmem>>) attributes {dimension_semantics = [#tpu.dimension_semantics<parallel>], iteration_bounds = array<i64: 1>, scalar_prefetch = 0 : i64, scratch_operands = 0 : i64, tpu.core_type = #tpu.core_type<tc>, window_params = [{transform_indices = @transform_0, window_bounds = array<i64: 16, 16>}, {pipeline_mode = #tpu.pipeline_mode<synchronous>, transform_indices = @transform_1, window_bounds = array<i64: 16, 128>}, {pipeline_mode = #tpu.pipeline_mode<synchronous>, transform_indices = @transform_2, window_bounds = array<i64: 1, 128>}, {pipeline_mode = #tpu.pipeline_mode<synchronous>, transform_indices = @transform_3, window_bounds = array<i64: 128, 128>}, {pipeline_mode = #tpu.pipeline_mode<synchronous>, transform_indices = @transform_4, window_bounds = array<i64: 1, 128>}, {pipeline_mode = #tpu.pipeline_mode<synchronous>, transform_indices = @transform_5, window_bounds = array<i64: 128, 128>}, {pipeline_mode = #tpu.pipeline_mode<synchronous>, transform_indices = @transform_6, window_bounds = array<i64: 1, 128>}, {pipeline_mode = #tpu.pipeline_mode<synchronous>, transform_indices = @transform_7, window_bounds = array<i64: 1, 128>}, {pipeline_mode = #tpu.pipeline_mode<synchronous>, transform_indices = @transform_8, window_bounds = array<i64: 1, 1>}, {transform_indices = @transform_9, window_bounds = array<i64: 16, 1>}]} {
    %c0 = arith.constant 0 : index
    %c0_0 = arith.constant 0 : index
    %0 = vector.load %arg1[%c0, %c0_0] : memref<16x16xbf16, #tpu.memory_space<vmem>>, vector<16x16xbf16>
    %c0_1 = arith.constant 0 : index
    %c0_2 = arith.constant 0 : index
    %1 = vector.load %arg2[%c0_1, %c0_2] : memref<16x128xbf16, #tpu.memory_space<vmem>>, vector<16x128xbf16>
    %cst = arith.constant dense<0.000000e+00> : vector<16x128xf32>
    %2 = tpu.matmul %0, %1, %cst {dimension_numbers = #tpu.dot_dimension_numbers<[1], [0], [0], [1], [0, 0, 1, 1], [], []>} : vector<16x16xbf16>, vector<16x128xbf16>, vector<16x128xf32> -> vector<16x128xf32>
    %c0_3 = arith.constant 0 : index
    %c0_4 = arith.constant 0 : index
    %3 = vector.load %arg3[%c0_3, %c0_4] : memref<1x128xf32, #tpu.memory_space<vmem>>, vector<1x128xf32>
    %4 = vector.broadcast %3 : vector<1x128xf32> to vector<16x128xf32>
    %5 = arith.addf %2, %4 : vector<16x128xf32>
    %cst_5 = arith.constant 2.000000e-01 : f32
    %6 = vector.broadcast %cst_5 : f32 to vector<16x128xf32>
    %7 = arith.mulf %6, %5 : vector<16x128xf32>
    %8 = arith.maximumf %5, %7 : vector<16x128xf32>
    %9 = arith.truncf %8 : vector<16x128xf32> to vector<16x128xbf16>
    %c0_6 = arith.constant 0 : index
    %c0_7 = arith.constant 0 : index
    %10 = vector.load %arg4[%c0_6, %c0_7] : memref<128x128xbf16, #tpu.memory_space<vmem>>, vector<128x128xbf16>
    %cst_8 = arith.constant dense<0.000000e+00> : vector<16x128xf32>
    %11 = tpu.matmul %9, %10, %cst_8 {dimension_numbers = #tpu.dot_dimension_numbers<[1], [0], [0], [1], [0, 0, 1, 1], [], []>} : vector<16x128xbf16>, vector<128x128xbf16>, vector<16x128xf32> -> vector<16x128xf32>
    %c0_9 = arith.constant 0 : index
    %c0_10 = arith.constant 0 : index
    %12 = vector.load %arg5[%c0_9, %c0_10] : memref<1x128xf32, #tpu.memory_space<vmem>>, vector<1x128xf32>
    %13 = vector.broadcast %12 : vector<1x128xf32> to vector<16x128xf32>
    %14 = arith.addf %11, %13 : vector<16x128xf32>
    %cst_11 = arith.constant 2.000000e-01 : f32
    %15 = vector.broadcast %cst_11 : f32 to vector<16x128xf32>
    %16 = arith.mulf %15, %14 : vector<16x128xf32>
    %17 = arith.maximumf %14, %16 : vector<16x128xf32>
    %18 = arith.truncf %17 : vector<16x128xf32> to vector<16x128xbf16>
    %c0_12 = arith.constant 0 : index
    %c0_13 = arith.constant 0 : index
    %19 = vector.load %arg6[%c0_12, %c0_13] : memref<128x128xbf16, #tpu.memory_space<vmem>>, vector<128x128xbf16>
    %cst_14 = arith.constant dense<0.000000e+00> : vector<16x128xf32>
    %20 = tpu.matmul %18, %19, %cst_14 {dimension_numbers = #tpu.dot_dimension_numbers<[1], [0], [0], [1], [0, 0, 1, 1], [], []>} : vector<16x128xbf16>, vector<128x128xbf16>, vector<16x128xf32> -> vector<16x128xf32>
    %c0_15 = arith.constant 0 : index
    %c0_16 = arith.constant 0 : index
    %21 = vector.load %arg7[%c0_15, %c0_16] : memref<1x128xf32, #tpu.memory_space<vmem>>, vector<1x128xf32>
    %22 = vector.broadcast %21 : vector<1x128xf32> to vector<16x128xf32>
    %23 = arith.addf %20, %22 : vector<16x128xf32>
    %cst_17 = arith.constant 2.000000e-01 : f32
    %24 = vector.broadcast %cst_17 : f32 to vector<16x128xf32>
    %25 = arith.mulf %24, %23 : vector<16x128xf32>
    %26 = arith.maximumf %23, %25 : vector<16x128xf32>
    %27 = arith.truncf %26 : vector<16x128xf32> to vector<16x128xbf16>
    %28 = arith.extf %27 : vector<16x128xbf16> to vector<16x128xf32>
    %c0_18 = arith.constant 0 : index
    %c0_19 = arith.constant 0 : index
    %29 = vector.load %arg8[%c0_18, %c0_19] : memref<1x128xf32, #tpu.memory_space<vmem>>, vector<1x128xf32>
    %30 = vector.broadcast %29 : vector<1x128xf32> to vector<16x128xf32>
    %31 = arith.mulf %28, %30 : vector<16x128xf32>
    %cst_20 = arith.constant dense<0.000000e+00> : vector<16xf32>
    %32 = vector.multi_reduction <add>, %31, %cst_20 [1] : vector<16x128xf32> to vector<16xf32>
    %33 = vector.shape_cast %32 : vector<16xf32> to vector<16x1xf32>
    %c0_21 = arith.constant 0 : index
    %c0_22 = arith.constant 0 : index
    %34 = vector.load %arg9[%c0_21, %c0_22] : memref<1x1xf32, #tpu.memory_space<vmem>>, vector<1x1xf32>
    %35 = vector.broadcast %34 : vector<1x1xf32> to vector<16x1xf32>
    %36 = arith.addf %33, %35 : vector<16x1xf32>
    %c0_23 = arith.constant 0 : index
    %c0_24 = arith.constant 0 : index
    %37 = vector.load %arg10[%c0_23, %c0_24] : memref<16x1xf32, #tpu.memory_space<vmem>>, vector<16x1xf32>
    tpu.vector_store %arg10[%c0_23, %c0_24], %36 {strides = array<i32>} : memref<16x1xf32, #tpu.memory_space<vmem>>, vector<16x1xf32>,
    return
  }
  func.func @transform_0(%arg0: i32) -> (i32, i32) {
    %c0_i32 = arith.constant 0 : i32
    %c0_i32_0 = arith.constant 0 : i32
    return %arg0, %c0_i32 : i32, i32
  }
  func.func @transform_1(%arg0: i32) -> (i32, i32) {
    %c0_i32 = arith.constant 0 : i32
    %c0_i32_0 = arith.constant 0 : i32
    %c0_i32_1 = arith.constant 0 : i32
    return %c0_i32, %c0_i32_0 : i32, i32
  }
  func.func @transform_2(%arg0: i32) -> (i32, i32) {
    %c0_i32 = arith.constant 0 : i32
    %c0_i32_0 = arith.constant 0 : i32
    %c0_i32_1 = arith.constant 0 : i32
    return %c0_i32, %c0_i32_0 : i32, i32
  }
  func.func @transform_3(%arg0: i32) -> (i32, i32) {
    %c0_i32 = arith.constant 0 : i32
    %c0_i32_0 = arith.constant 0 : i32
    %c0_i32_1 = arith.constant 0 : i32
    return %c0_i32, %c0_i32_0 : i32, i32
  }
  func.func @transform_4(%arg0: i32) -> (i32, i32) {
    %c0_i32 = arith.constant 0 : i32
    %c0_i32_0 = arith.constant 0 : i32
    %c0_i32_1 = arith.constant 0 : i32
    return %c0_i32, %c0_i32_0 : i32, i32
  }
  func.func @transform_5(%arg0: i32) -> (i32, i32) {
    %c0_i32 = arith.constant 0 : i32
    %c0_i32_0 = arith.constant 0 : i32
    %c0_i32_1 = arith.constant 0 : i32
    return %c0_i32, %c0_i32_0 : i32, i32
  }
  func.func @transform_6(%arg0: i32) -> (i32, i32) {
    %c0_i32 = arith.constant 0 : i32
    %c0_i32_0 = arith.constant 0 : i32
    %c0_i32_1 = arith.constant 0 : i32
    return %c0_i32, %c0_i32_0 : i32, i32
  }
  func.func @transform_7(%arg0: i32) -> (i32, i32) {
    %c0_i32 = arith.constant 0 : i32
    %c0_i32_0 = arith.constant 0 : i32
    %c0_i32_1 = arith.constant 0 : i32
    return %c0_i32, %c0_i32_0 : i32, i32
  }
  func.func @transform_8(%arg0: i32) -> (i32, i32) {
    %c0_i32 = arith.constant 0 : i32
    %c0_i32_0 = arith.constant 0 : i32
    %c0_i32_1 = arith.constant 0 : i32
    return %c0_i32, %c0_i32_0 : i32, i32
  }
  func.func @transform_9(%arg0: i32) -> (i32, i32) {
    %c0_i32 = arith.constant 0 : i32
    %c0_i32_0 = arith.constant 0 : i32
    return %arg0, %c0_i32 : i32, i32
  }
}

</mosaic_0001>

<bundles_post_ra>
// kernel: lgn_discriminator_forward.1
= control target key start
LH: loop header
LB: loop body
LE: loop exit
PB: predicated region body
PF: predicated region fallthrough
CT: control target
= control target key end

     0   :  { %s691_s0 = inlined_call_operand.vmem [shape: bf16[16,16], index: 0, kind: input, shape index: {}]   ;;  %s692_s1 = inlined_call_operand.vmem [shape: bf16[16,128], index: 1, kind: input, shape index: {}]   ;;  %s693_s2 = inlined_call_operand.vmem [shape: f32[1,128], index: 2, kind: input, shape index: {}]   ;;  %s694_s3 = inlined_call_operand.hbm [shape: bf16[128,128], index: 3, kind: input, shape index: {}]   ;;  %s695_s4 = inlined_call_operand.vmem [shape: f32[1,128], index: 4, kind: input, shape index: {}]   ;;  %s696_s5 = inlined_call_operand.hbm [shape: bf16[128,128], index: 5, kind: input, shape index: {}]   ;;  %s697_s6 = inlined_call_operand.vmem [shape: f32[1,128], index: 6, kind: input, shape index: {}]   ;;  %s698_s7 = inlined_call_operand.vmem [shape: f32[1,128], index: 7, kind: input, shape index: {}]   ;;  %s699_s8 = inlined_call_operand.<no memory space> [shape: f32[1,1], index: 8, kind: input, shape index: {}]   ;;  %s700_s9 = inlined_call_operand.vmem [shape: f32[16,1], index: 9, kind: output, shape index: {}]  }
   0x1   :  { %v14_v0 = vstv %s699_s8 }
   0x2   :  { %15 = vst [vmem:[#allocation2] sm:$0x1] %v14_v0 }
   0x3   :  { %16 = vsyncpa [#allocation4], 0 }
   0x4   :  { %17 = vsyncpa [#allocation6], 0  ;;  %s564_s11 = smov [#allocation3]   ;;  %s516_s15 = scalar_lea.hbm %s694_s3, 1024 }
   0x5   :  { %s29_s12 = sshll.u32 %s564_s11, 4  ;;  %p517_p0 = scmp.ne.s32.totalorder %s694_s3, %s516_s15  ;;  %s30_s12 = int_to_ptr.vmem [resolvable:$true] %s29_s12 }
   0x6   :  { %p520_p1 = scmp.lt.u32.totalorder %s516_s15, %s694_s3 }
   0x8   :  { %p522_p2 = pnand %p520_p1, %p517_p0 }
   0xa   :  { %525 = shalt.err (!%p522_p2)
}
   0xb   :  { %s526_s8 = scalar_lea.vmem %s30_s12, 1024  ;;  %p531_p4 = scmp.lt.s32.totalorder %s30_s12, %s30_s12 }
   0xc   :  { %p527_p3 = scmp.ne.s32.totalorder %s30_s12, %s526_s8  ;;  %p532_p5 = scmp.lt.s32.totalorder %s526_s8, %s526_s8 }
   0xe   :  { %p533_p6 = por %p532_p5, %p531_p4 }
  0x10   :  { %p534_p7 = pnand %p533_p6, %p527_p3 }
  0x12   :  { %537 = shalt.err (!%p534_p7)
}
  0x13   :  { %s565_s20 = smov 64   ;;  %s566_s21 = smov 4  }
  0x14   :  { %35 = dma.hbm_to_vmem [thread:$0]  %s694_s3, 1024, %s30_s12, [#allocation4], %s565_s20, %s565_s20, %s566_s21  }
  0x15   :  { %s567_s24 = smov [#allocation5]   ;;  %s538_s28 = scalar_lea.hbm %s696_s5, 1024 }
  0x16   :  { %s43_s25 = sshll.u32 %s567_s24, 4  ;;  %p539_p8 = scmp.ne.s32.totalorder %s696_s5, %s538_s28  ;;  %s44_s25 = int_to_ptr.vmem [resolvable:$true] %s43_s25 }
  0x17   :  { %p542_p9 = scmp.lt.u32.totalorder %s538_s28, %s696_s5 }
  0x19   :  { %p544_p10 = pnand %p542_p9, %p539_p8 }
  0x1b   :  { %547 = shalt.err (!%p544_p10)
}
  0x1c   :  { %s548_s13 = scalar_lea.vmem %s44_s25, 1024  ;;  %p553_p12 = scmp.lt.s32.totalorder %s44_s25, %s44_s25 }
  0x1d   :  { %p549_p11 = scmp.ne.s32.totalorder %s44_s25, %s548_s13  ;;  %p554_p13 = scmp.lt.s32.totalorder %s548_s13, %s548_s13 }
  0x1f   :  { %p555_p0 = por %p554_p13, %p553_p12 }
  0x21   :  { %p556_p1 = pnand %p555_p0, %p549_p11 }
  0x23   :  { %559 = shalt.err (!%p556_p1)
}
  0x24   :  { %49 = dma.hbm_to_vmem [thread:$0]  %s696_s5, 1024, %s44_s25, [#allocation6], %s565_s20, %s565_s20, %s566_s21  }
  0x25   :  { %560 = dma.done.wait [#allocation4], 1024  }
  0x26   :  { %561 = vsyncadd [#allocation4], 4294966272 }
  0x27   :  { %562 = dma.done.wait [#allocation6], 1024  }
  0x28   :  { %563 = vsyncadd [#allocation6], 4294966272  ;;  %v568_v1 = vmov 0.0   ;;  %vm569_vm0 = vmmov 0   ;;  %v498_v2 = vld [vmem:[%s692_s1] sm:$0xff]   ;;  %vm85_vm1 = vcmask 130048  }
  0x29   :  { %446 = vmatprep.subr.bf16.mxu0 %v568_v1  ;;  %448 = vmatprep.mubr.msk.bf16.mxu0 %vm569_vm0, %v568_v1  ;;  %v499_v3 = vld [vmem:[%s691_s0] sm:$0xff]   ;;  %v501_v5 = vld [vmem:[#allocation3 + $0x8] sm:$0xff]   ;;  %v502_v6 = vld [vmem:[#allocation3 + $0x10] sm:$0xff]   ;;  %vm393_vm2 = vcmask 7168  }
  0x2a   :  { %452 = vmatprep.subr.bf16.mxu1 %v568_v1  ;;  %468 = vmatprep.mubr.msk.bf16.mxu1 %vm569_vm0, %v568_v1  ;;  %v500_v4 = vld [vmem:[#allocation3] sm:$0xff]   ;;  %v503_v7 = vld [vmem:[#allocation3 + $0x18] sm:$0xff]   ;;  %v505_v9 = vld [vmem:[#allocation3 + $0x28] sm:$0xff]  }
  0x2b   :  { %447 = vmatpush3.bf16.msra.mxu0 %v498_v2  ;;  %453 = vmatpush3.bf16.msra.mxu1 %v500_v4  ;;  %v504_v8 = vld [vmem:[#allocation3 + $0x20] sm:$0xff]   ;;  %v506_v10 = vld [vmem:[#allocation3 + $0x30] sm:$0xff]   ;;  %v507_v11 = vld [vmem:[#allocation3 + $0x38] sm:$0xff]  }
  0x2c   :  { %472 = vmatprep.subr.bf16.mxu0 %v568_v1  ;;  %454 = vmatprep.subr.bf16.mxu1 %v568_v1  ;;  %v508_v12 = vld [vmem:[#allocation5] sm:$0xff]   ;;  %v509_v13 = vld [vmem:[#allocation5 + $0x8] sm:$0xff]   ;;  %v510_v14 = vld [vmem:[#allocation5 + $0x10] sm:$0xff]  }
  0x2d   :  { %v511_v15 = vld [vmem:[#allocation5 + $0x18] sm:$0xff]   ;;  %v512_v16 = vld [vmem:[#allocation5 + $0x20] sm:$0xff]   ;;  %v513_v29 = vld [vmem:[#allocation5 + $0x28] sm:$0xff]  }
  0x2e   :  { %449 = vmatmul.mubr.msk.bf16.vlgmr.msra.gmra.mrb[0].mxu0 %vm85_vm1, %v499_v3  ;;  %v402_v17 = vld [vmem:[%s693_s2] ss:$0 sm:$0xff]  ;;  %v514_v30 = vld [vmem:[#allocation5 + $0x30] sm:$0xff]  }
  0x2f   :  { %488 = vmatprep.mubr.msk.bf16.mxu0 %vm569_vm0, %v568_v1  ;;  %455 = vmatpush3.bf16.msra.mxu1 %v501_v5  ;;  %v515_v31 = vld [vmem:[#allocation5 + $0x38] sm:$0xff]  }
  0x30   :  { %456 = vmatprep.subr.bf16.mxu1 %v568_v1  ;;  %473 = vmatpush3.bf16.msra.mxu0 %v508_v12  ;;  %v406_v32 = vld [vmem:[%s695_s4] ss:$0 sm:$0xff] }
  0x31   :  { %474 = vmatprep.subr.bf16.mxu0 %v568_v1  ;;  %v415_v44 = vld [vmem:[%s697_s6] ss:$0 sm:$0xff] }
  0x32   :  { %v424_v56 = vld [vmem:[%s698_s7] ss:$0 sm:$0xff] }
  0x33   :  { %457 = vmatpush3.bf16.msra.mxu1 %v502_v6  ;;  %v425_v61 = vld [vmem:[#allocation2] ss:$0 sm:$0xff] }
  0x34   :  { %458 = vmatprep.subr.bf16.mxu1 %v568_v1  ;;  %475 = vmatpush3.bf16.msra.mxu0 %v509_v13 }
  0x35   :  { %476 = vmatprep.subr.bf16.mxu0 %v568_v1 }
  0x37   :  { %459 = vmatpush3.bf16.msra.mxu1 %v503_v7 }
  0x38   :  { %460 = vmatprep.subr.bf16.mxu1 %v568_v1  ;;  %477 = vmatpush3.bf16.msra.mxu0 %v510_v14 }
  0x39   :  { %478 = vmatprep.subr.bf16.mxu0 %v568_v1 }
  0x3b   :  { %461 = vmatpush3.bf16.msra.mxu1 %v504_v8 }
  0x3c   :  { %462 = vmatprep.subr.bf16.mxu1 %v568_v1  ;;  %479 = vmatpush3.bf16.msra.mxu0 %v511_v15 }
  0x3d   :  { %480 = vmatprep.subr.bf16.mxu0 %v568_v1 }
  0x3f   :  { %463 = vmatpush3.bf16.msra.mxu1 %v505_v9 }
  0x40   :  { %464 = vmatprep.subr.bf16.mxu1 %v568_v1  ;;  %481 = vmatpush3.bf16.msra.mxu0 %v512_v16 }
  0x41   :  { %482 = vmatprep.subr.bf16.mxu0 %v568_v1 }
  0x43   :  { %465 = vmatpush3.bf16.msra.mxu1 %v506_v10 }
  0x44   :  { %466 = vmatprep.subr.bf16.mxu1 %v568_v1  ;;  %483 = vmatpush3.bf16.msra.mxu0 %v513_v29 }
  0x45   :  { %484 = vmatprep.subr.bf16.mxu0 %v568_v1 }
  0x47   :  { %467 = vmatpush3.bf16.msra.mxu1 %v507_v11 }
  0x48   :  { %485 = vmatpush3.bf16.msra.mxu0 %v514_v30 }
  0x49   :  { %486 = vmatprep.subr.bf16.mxu0 %v568_v1 }
  0x4c   :  { %487 = vmatpush3.bf16.msra.mxu0 %v515_v31 }
 0x101   :  { %v123_v18 = vpop.f32.mrb[0].mxu0 }
 0x102   :  { %v124_v19 = vadd.f32 %v402_v17, %v123_v18  ;;  %v450_v20 = vpop.f32.mrb[1].mxu0 }
 0x103   :  { %v126_v21 = vpop.f32.mrb[2].mxu0 }
 0x104   :  { %v130_v22 = vmul.f32 0.2, %v124_v19  ;;  %v127_v23 = vadd.f32 %v402_v17, %v126_v21  ;;  %v451_v24 = vpop.f32.mrb[3].mxu0 }
 0x106   :  { %v131_v25 = vmul.f32 0.2, %v127_v23  ;;  %v132_v26 = vmax.f32 %v124_v19, %v130_v22 }
 0x108   :  { %v133_v27 = vmax.f32 %v127_v23, %v131_v25 }
 0x10a   :  { %v134_v28 = vpack.c.bf16 %v133_v27, %v132_v26 }
 0x10c   :  { %469 = vmatmul.mubr.bf16.vlgmr.msra.gmra.mrb[0].mxu1 %v134_v28 }
 0x1df   :  { %v240_v33 = vpop.f32.mrb[0].mxu1 }
 0x1e0   :  { %v241_v34 = vadd.f32 %v406_v32, %v240_v33  ;;  %v470_v35 = vpop.f32.mrb[1].mxu1 }
 0x1e1   :  { %v243_v36 = vpop.f32.mrb[2].mxu1 }
 0x1e2   :  { %v247_v37 = vmul.f32 0.2, %v241_v34  ;;  %v244_v38 = vadd.f32 %v406_v32, %v243_v36  ;;  %v471_v39 = vpop.f32.mrb[3].mxu1 }
 0x1e4   :  { %v248_v40 = vmul.f32 0.2, %v244_v38  ;;  %v249_v41 = vmax.f32 %v241_v34, %v247_v37 }
 0x1e6   :  { %v250_v42 = vmax.f32 %v244_v38, %v248_v40 }
 0x1e8   :  { %v251_v43 = vpack.c.bf16 %v250_v42, %v249_v41 }
 0x1ea   :  { %489 = vmatmul.mubr.bf16.vlgmr.msra.gmra.mrb[4].mxu0 %v251_v43 }
 0x2bd   :  { %v357_v45 = vpop.f32.mrb[4].mxu0 }
 0x2be   :  { %v358_v46 = vadd.f32 %v415_v44, %v357_v45  ;;  %v490_v47 = vpop.f32.mrb[5].mxu0 }
 0x2bf   :  { %v360_v48 = vpop.f32.mrb[6].mxu0 }
 0x2c0   :  { %v364_v49 = vmul.f32 0.2, %v358_v46  ;;  %v361_v50 = vadd.f32 %v415_v44, %v360_v48  ;;  %v491_v51 = vpop.f32.mrb[7].mxu0 }
 0x2c2   :  { %v365_v52 = vmul.f32 0.2, %v361_v50  ;;  %v366_v53 = vmax.f32 %v358_v46, %v364_v49 }
 0x2c4   :  { %v367_v54 = vmax.f32 %v361_v50, %v365_v52 }
 0x2c6   :  { %v368_v55 = vpack.c.bf16 %v367_v54, %v366_v53 }
 0x2c8   :  { %v369_v57 = vunpack.c.l.bf16 %v368_v55  ;;  %v370_v59 = vunpack.c.h.bf16 %v368_v55 }
 0x2ca   :  { %v378_v58 = vmul.f32 %v424_v56, %v369_v57  ;;  %v379_v60 = vmul.f32 %v424_v56, %v370_v59 }
 0x2cc   :  { %380 = vadd.xlane.f32.xlu0 %v378_v58 }
 0x2d0   :  { %382 = vadd.xlane.f32.xlu0 %v379_v60 }
 0x359   :  { %v381_v62 = vpop.xlane.xlu0 %380 }
 0x35a   :  { %v391_v63 = vadd.f32 %v425_v61, %v381_v62 }
 0x35c   :  { %394 = vst.msk [vmem:[%s700_s9] sm:$0xff] %vm393_vm2, %v391_v63 }
 0x35d   :  { %v383_v0 = vpop.xlane.xlu0 %382 }
 0x35e   :  { %v392_v1 = vadd.f32 %v425_v61, %v383_v0 }
 0x360   :  { %395 = vst.msk [vmem:[%s700_s9 + $0x8] sm:$0xff] %vm393_vm2, %v392_v1 }
 0x361   :  { %400 = vsyncpa [#allocation4], 1 }
 0x362   :  { %401 = vsyncpa [#allocation6], 1 }

</bundles_post_ra>
